<compile_context>
chip_gen: v7x
topology: tpu7x:2x2x1
jax: 0.10.0
libtpu: 0.0.40
codegen_flags: <defaults>
</compile_context>

<pallas_src>
import functools

import jax
import jax.numpy as jnp
from jax.experimental import pallas as pl
from jax.experimental.pallas import tpu as pltpu


def _round_up(x, m):
    return ((x + m - 1) // m) * m


def _decoder_vae_kernel(
    z_ref,       # (B, L)    latent
    fp_ref,      # (B, S)    struct fingerprint
    w0z_ref,     # (L, 3*Hp) fused fc1+LSTM0 gate weights (z rows)
    w0s_ref,     # (S, 3*Hp) fused fc1+LSTM0 gate weights (struct rows)
    b0_ref,      # (1, 3*Hp) fused fc1+LSTM0 gate bias
    w1_ref,      # (Hp, 3*Hp) LSTM layer-1 gate weights (forget gate dropped, lane-padded)
    b1_ref,      # (1, 3*Hp)
    w2_ref,      # (Hp, Op)  fc2 weight (zero-padded)
    b2_ref,      # (1, Op)
    out_ref,     # (B, Op)
    *, hp,
):
    def cell(gates):
        # gate order per 128-lane-aligned block: i, g, o  (forget gate removed: c_prev = 0)
        i = jax.nn.sigmoid(gates[:, 0 * hp:1 * hp])
        g = jnp.tanh(gates[:, 1 * hp:2 * hp])
        o = jax.nn.sigmoid(gates[:, 2 * hp:3 * hp])
        return o * jnp.tanh(i * g)          # c = f*c_prev + i*g, c_prev = 0

    # LSTM layer 0 gates with fc1 pre-fused and concat fused (two dots on z / struct_fp).
    g0 = (jnp.dot(z_ref[...], w0z_ref[...], preferred_element_type=jnp.float32)
          + jnp.dot(fp_ref[...], w0s_ref[...], preferred_element_type=jnp.float32)
          + b0_ref[...])
    h0 = cell(g0)

    # LSTM layer 1 (zero initial state; recurrent weights vanish).
    g1 = jnp.dot(h0, w1_ref[...], preferred_element_type=jnp.float32) + b1_ref[...]
    h1 = cell(g1)

    # fc2 + sigmoid, written to a lane-dense (Op multiple of 128) output block.
    logits = jnp.dot(h1, w2_ref[...], preferred_element_type=jnp.float32) + b2_ref[...]
    out_ref[...] = jax.nn.sigmoid(logits)


def prep_kernel_params(p, latent_dim):
    """Host-side algebraic fusion + lane-aligned packing of PyTorch-style parameters."""
    H = p["w1"].shape[1]
    O = p["w2"].shape[1]
    Hp = _round_up(H, 128)
    Op = _round_up(O, 128)

    def keep_and_pad_gates(a4h):
        # Drop the forget-gate block (cols H:2H); pad each kept gate block (i, g, o) to Hp lanes.
        blocks = [a4h[..., 0:H], a4h[..., 2 * H:3 * H], a4h[..., 3 * H:4 * H]]
        pad = [(0, 0)] * (a4h.ndim - 1) + [(0, Hp - H)]
        return jnp.concatenate([jnp.pad(b, pad) for b in blocks], axis=-1)

    # Fuse fc1 (no activation) into the LSTM layer-0 gate matmul.
    W0 = keep_and_pad_gates(p["w1"] @ p["w_ih0"])                                   # (D, 3Hp)
    b0 = keep_and_pad_gates(p["b1"] @ p["w_ih0"] + p["b_ih0"] + p["b_hh0"])         # (3Hp,)

    # LSTM layer 1 (w_hh1 unused: seq_len == 1 and h0_prev == 0).
    W1 = keep_and_pad_gates(p["w_ih1"])                                             # (H, 3Hp)
    W1 = jnp.pad(W1, ((0, Hp - H), (0, 0)))                                         # (Hp, 3Hp)
    b1 = keep_and_pad_gates(p["b_ih1"] + p["b_hh1"])                                # (3Hp,)

    # fc2 zero-padded to lane-dense output.
    W2 = jnp.pad(p["w2"], ((0, Hp - H), (0, Op - O)))                               # (Hp, Op)
    b2 = jnp.pad(p["b2"], ((0, Op - O),))                                           # (Op,)

    return {
        "w0z": W0[:latent_dim], "w0s": W0[latent_dim:], "b0": b0[None, :],
        "w1": W1, "b1": b1[None, :],
        "w2": W2, "b2": b2[None, :],
        "Hp": Hp, "Op": Op, "O": O,
    }


def decoder_vae_forward(z, struct_fp, kp):
    """Fused DecoderVAE forward pass in one Pallas kernel (output sliced to true width)."""
    B = z.shape[0]
    Hp, Op, O = kp["Hp"], kp["Op"], kp["O"]
    vmem = pl.BlockSpec(memory_space=pltpu.MemorySpace.VMEM)

    out_pad = pl.pallas_call(
        functools.partial(_decoder_vae_kernel, hp=Hp),
        out_shape=jax.ShapeDtypeStruct((B, Op), jnp.float32),
        in_specs=[vmem] * 9,
        out_specs=vmem,
    )(z, struct_fp,
      kp["w0z"], kp["w0s"], kp["b0"],
      kp["w1"], kp["b1"],
      kp["w2"], kp["b2"])
    return out_pad[:, :O]


def init_params(key, latent_dim, struct_input_size, hidden_size, output_size):
    """Deterministic synthetic parameters matching the PyTorch module's shapes.

    Weights are stored as (in_features, out_features), i.e. transposed vs. torch,
    so y = x @ W + b.  w_hh* are included for fidelity but contribute nothing
    (single timestep, zero initial state)."""
    D = latent_dim + struct_input_size
    H = hidden_size
    O = output_size
    keys = jax.random.split(key, 12)

    def u(k, shape, fan_in):
        bound = 1.0 / jnp.sqrt(float(fan_in))
        return jax.random.uniform(k, shape, jnp.float32, -bound, bound)

    return {
        "w1": u(keys[0], (D, H), D), "b1": u(keys[1], (H,), D),
        "w_ih0": u(keys[2], (H, 4 * H), H), "w_hh0": u(keys[3], (H, 4 * H), H),
        "b_ih0": u(keys[4], (4 * H,), H), "b_hh0": u(keys[5], (4 * H,), H),
        "w_ih1": u(keys[6], (H, 4 * H), H), "w_hh1": u(keys[7], (H, 4 * H), H),
        "b_ih1": u(keys[8], (4 * H,), H), "b_hh1": u(keys[9], (4 * H,), H),
        "w2": u(keys[10], (H, O), H), "b2": u(keys[11], (O,), H),
    }


def _reference_forward(z, struct_fp, p):
    """Pure-JAX reference mirroring the PyTorch forward exactly (full LSTM equations)."""
    x = jnp.concatenate([z, struct_fp], axis=-1)
    h_in = x @ p["w1"] + p["b1"]                      # fc1 (no activation)
    H = p["w1"].shape[1]
    B = x.shape[0]
    zeros = jnp.zeros((B, H), jnp.float32)

    def lstm_step(inp, h_prev, c_prev, w_ih, w_hh, b_ih, b_hh):
        g = inp @ w_ih + h_prev @ w_hh + b_ih + b_hh
        i = jax.nn.sigmoid(g[:, 0 * H:1 * H])
        f = jax.nn.sigmoid(g[:, 1 * H:2 * H])
        gg = jnp.tanh(g[:, 2 * H:3 * H])
        o = jax.nn.sigmoid(g[:, 3 * H:4 * H])
        c = f * c_prev + i * gg
        return o * jnp.tanh(c), c

    h0, _ = lstm_step(h_in, zeros, zeros, p["w_ih0"], p["w_hh0"], p["b_ih0"], p["b_hh0"])
    h1, _ = lstm_step(h0, zeros, zeros, p["w_ih1"], p["w_hh1"], p["b_ih1"], p["b_hh1"])
    return jax.nn.sigmoid(h1 @ p["w2"] + p["b2"])


if __name__ == "__main__":
    latent_dim = 8
    struct_input_size = 24
    hidden_size = 32
    output_size = 48
    batch = 2

    key = jax.random.PRNGKey(0)
    k_params, k_z, k_fp = jax.random.split(key, 3)

    params = init_params(k_params, latent_dim, struct_input_size, hidden_size, output_size)
    kparams = prep_kernel_params(params, latent_dim)

    z = jax.random.normal(k_z, (batch, latent_dim), jnp.float32)
    struct_fp = jax.random.normal(k_fp, (batch, struct_input_size), jnp.float32)

    out = decoder_vae_forward(z, struct_fp, kparams)
    out = jax.block_until_ready(out)

    ref = _reference_forward(z, struct_fp, params)
    assert out.shape == (batch, output_size)
    assert jnp.allclose(out, ref, atol=1e-5, rtol=1e-5), "Pallas output mismatch vs reference"

    print("KERNEL_OK")
</pallas_src>

<mosaic_0001>
module attributes {stable_mosaic.version = 11 : i64} {
  func.func @_decoder_vae_kernel(%arg0: memref<2x8xf32, #tpu.memory_space<vmem>>, %arg1: memref<2x24xf32, #tpu.memory_space<vmem>>, %arg2: memref<8x384xf32, #tpu.memory_space<vmem>>, %arg3: memref<24x384xf32, #tpu.memory_space<vmem>>, %arg4: memref<1x384xf32, #tpu.memory_space<vmem>>, %arg5: memref<128x384xf32, #tpu.memory_space<vmem>>, %arg6: memref<1x384xf32, #tpu.memory_space<vmem>>, %arg7: memref<128x128xf32, #tpu.memory_space<vmem>>, %arg8: memref<1x128xf32, #tpu.memory_space<vmem>>, %arg9: memref<2x128xf32, #tpu.memory_space<vmem>>) attributes {dimension_semantics = [], scalar_prefetch = 0 : i64, scratch_operands = 0 : i64, tpu.core_type = #tpu.core_type<tc>} {
    %c0 = arith.constant 0 : index
    %c0_0 = arith.constant 0 : index
    %0 = vector.load %arg0[%c0, %c0_0] : memref<2x8xf32, #tpu.memory_space<vmem>>, vector<2x8xf32>
    %c0_1 = arith.constant 0 : index
    %c0_2 = arith.constant 0 : index
    %1 = vector.load %arg2[%c0_1, %c0_2] : memref<8x384xf32, #tpu.memory_space<vmem>>, vector<8x384xf32>
    %cst = arith.constant dense<0.000000e+00> : vector<2x384xf32>
    %2 = tpu.matmul %0, %1, %cst {dimension_numbers = #tpu.dot_dimension_numbers<[1], [0], [0], [1], [0, 0, 1, 1], [], []>} : vector<2x8xf32>, vector<8x384xf32>, vector<2x384xf32> -> vector<2x384xf32>
    %c0_3 = arith.constant 0 : index
    %c0_4 = arith.constant 0 : index
    %3 = vector.load %arg1[%c0_3, %c0_4] : memref<2x24xf32, #tpu.memory_space<vmem>>, vector<2x24xf32>
    %c0_5 = arith.constant 0 : index
    %c0_6 = arith.constant 0 : index
    %4 = vector.load %arg3[%c0_5, %c0_6] : memref<24x384xf32, #tpu.memory_space<vmem>>, vector<24x384xf32>
    %cst_7 = arith.constant dense<0.000000e+00> : vector<2x384xf32>
    %5 = tpu.matmul %3, %4, %cst_7 {dimension_numbers = #tpu.dot_dimension_numbers<[1], [0], [0], [1], [0, 0, 1, 1], [], []>} : vector<2x24xf32>, vector<24x384xf32>, vector<2x384xf32> -> vector<2x384xf32>
    %6 = arith.addf %2, %5 : vector<2x384xf32>
    %c0_8 = arith.constant 0 : index
    %c0_9 = arith.constant 0 : index
    %7 = vector.load %arg4[%c0_8, %c0_9] : memref<1x384xf32, #tpu.memory_space<vmem>>, vector<1x384xf32>
    %8 = vector.broadcast %7 : vector<1x384xf32> to vector<2x384xf32>
    %9 = arith.addf %6, %8 : vector<2x384xf32>
    %10 = vector.extract_strided_slice %9 {offsets = [0, 0], sizes = [2, 128], strides = [1, 1]} : vector<2x384xf32> to vector<2x128xf32>
    %11 = arith.negf %10 : vector<2x128xf32>
    %12 = math.exp %11 : vector<2x128xf32>
    %cst_10 = arith.constant 1.000000e+00 : f32
    %13 = vector.broadcast %cst_10 : f32 to vector<2x128xf32>
    %14 = arith.addf %13, %12 : vector<2x128xf32>
    %15 = arith.divf %13, %14 : vector<2x128xf32>
    %16 = vector.extract_strided_slice %9 {offsets = [0, 128], sizes = [2, 128], strides = [1, 1]} : vector<2x384xf32> to vector<2x128xf32>
    %17 = math.tanh %16 : vector<2x128xf32>
    %18 = vector.extract_strided_slice %9 {offsets = [0, 256], sizes = [2, 128], strides = [1, 1]} : vector<2x384xf32> to vector<2x128xf32>
    %19 = arith.negf %18 : vector<2x128xf32>
    %20 = math.exp %19 : vector<2x128xf32>
    %cst_11 = arith.constant 1.000000e+00 : f32
    %21 = vector.broadcast %cst_11 : f32 to vector<2x128xf32>
    %22 = arith.addf %21, %20 : vector<2x128xf32>
    %23 = arith.divf %21, %22 : vector<2x128xf32>
    %24 = arith.mulf %15, %17 : vector<2x128xf32>
    %25 = math.tanh %24 : vector<2x128xf32>
    %26 = arith.mulf %23, %25 : vector<2x128xf32>
    %c0_12 = arith.constant 0 : index
    %c0_13 = arith.constant 0 : index
    %27 = vector.load %arg5[%c0_12, %c0_13] : memref<128x384xf32, #tpu.memory_space<vmem>>, vector<128x384xf32>
    %cst_14 = arith.constant dense<0.000000e+00> : vector<2x384xf32>
    %28 = tpu.matmul %26, %27, %cst_14 {dimension_numbers = #tpu.dot_dimension_numbers<[1], [0], [0], [1], [0, 0, 1, 1], [], []>} : vector<2x128xf32>, vector<128x384xf32>, vector<2x384xf32> -> vector<2x384xf32>
    %c0_15 = arith.constant 0 : index
    %c0_16 = arith.constant 0 : index
    %29 = vector.load %arg6[%c0_15, %c0_16] : memref<1x384xf32, #tpu.memory_space<vmem>>, vector<1x384xf32>
    %30 = vector.broadcast %29 : vector<1x384xf32> to vector<2x384xf32>
    %31 = arith.addf %28, %30 : vector<2x384xf32>
    %32 = vector.extract_strided_slice %31 {offsets = [0, 0], sizes = [2, 128], strides = [1, 1]} : vector<2x384xf32> to vector<2x128xf32>
    %33 = arith.negf %32 : vector<2x128xf32>
    %34 = math.exp %33 : vector<2x128xf32>
    %cst_17 = arith.constant 1.000000e+00 : f32
    %35 = vector.broadcast %cst_17 : f32 to vector<2x128xf32>
    %36 = arith.addf %35, %34 : vector<2x128xf32>
    %37 = arith.divf %35, %36 : vector<2x128xf32>
    %38 = vector.extract_strided_slice %31 {offsets = [0, 128], sizes = [2, 128], strides = [1, 1]} : vector<2x384xf32> to vector<2x128xf32>
    %39 = math.tanh %38 : vector<2x128xf32>
    %40 = vector.extract_strided_slice %31 {offsets = [0, 256], sizes = [2, 128], strides = [1, 1]} : vector<2x384xf32> to vector<2x128xf32>
    %41 = arith.negf %40 : vector<2x128xf32>
    %42 = math.exp %41 : vector<2x128xf32>
    %cst_18 = arith.constant 1.000000e+00 : f32
    %43 = vector.broadcast %cst_18 : f32 to vector<2x128xf32>
    %44 = arith.addf %43, %42 : vector<2x128xf32>
    %45 = arith.divf %43, %44 : vector<2x128xf32>
    %46 = arith.mulf %37, %39 : vector<2x128xf32>
    %47 = math.tanh %46 : vector<2x128xf32>
    %48 = arith.mulf %45, %47 : vector<2x128xf32>
    %c0_19 = arith.constant 0 : index
    %c0_20 = arith.constant 0 : index
    %49 = vector.load %arg7[%c0_19, %c0_20] : memref<128x128xf32, #tpu.memory_space<vmem>>, vector<128x128xf32>
    %cst_21 = arith.constant dense<0.000000e+00> : vector<2x128xf32>
    %50 = tpu.matmul %48, %49, %cst_21 {dimension_numbers = #tpu.dot_dimension_numbers<[1], [0], [0], [1], [0, 0, 1, 1], [], []>} : vector<2x128xf32>, vector<128x128xf32>, vector<2x128xf32> -> vector<2x128xf32>
    %c0_22 = arith.constant 0 : index
    %c0_23 = arith.constant 0 : index
    %51 = vector.load %arg8[%c0_22, %c0_23] : memref<1x128xf32, #tpu.memory_space<vmem>>, vector<1x128xf32>
    %52 = vector.broadcast %51 : vector<1x128xf32> to vector<2x128xf32>
    %53 = arith.addf %50, %52 : vector<2x128xf32>
    %54 = arith.negf %53 : vector<2x128xf32>
    %55 = math.exp %54 : vector<2x128xf32>
    %cst_24 = arith.constant 1.000000e+00 : f32
    %56 = vector.broadcast %cst_24 : f32 to vector<2x128xf32>
    %57 = arith.addf %56, %55 : vector<2x128xf32>
    %58 = arith.divf %56, %57 : vector<2x128xf32>
    %c0_25 = arith.constant 0 : index
    %c0_26 = arith.constant 0 : index
    %59 = vector.load %arg9[%c0_25, %c0_26] : memref<2x128xf32, #tpu.memory_space<vmem>>, vector<2x128xf32>
    tpu.vector_store %arg9[%c0_25, %c0_26], %58 {strides = array<i32>} : memref<2x128xf32, #tpu.memory_space<vmem>>, vector<2x128xf32>,
    return
  }
}

</mosaic_0001>

<bundles_post_ra>
// kernel: tpu_custom_call.1
= control target key start
LH: loop header
LB: loop body
LE: loop exit
PB: predicated region body
PF: predicated region fallthrough
CT: control target
= control target key end

     0   :  { %14 = vsyncpa [#allocation3], 0  ;;  %s1442_s0 = inlined_call_operand.hbm [shape: f32[2,8], index: 0, kind: input, shape index: {}]   ;;  %s1443_s1 = inlined_call_operand.hbm [shape: f32[2,24], index: 1, kind: input, shape index: {}]   ;;  %s1444_s2 = inlined_call_operand.hbm [shape: f32[8,384], index: 2, kind: input, shape index: {}]   ;;  %s1445_s3 = inlined_call_operand.hbm [shape: f32[24,384], index: 3, kind: input, shape index: {}]   ;;  %s1446_s4 = inlined_call_operand.vmem [shape: f32[1,384], index: 4, kind: input, shape index: {}]   ;;  %s1447_s5 = inlined_call_operand.hbm [shape: f32[128,384], index: 5, kind: input, shape index: {}]   ;;  %s1448_s6 = inlined_call_operand.vmem [shape: f32[1,384], index: 6, kind: input, shape index: {}]   ;;  %s1449_s7 = inlined_call_operand.hbm [shape: f32[128,128], index: 7, kind: input, shape index: {}]   ;;  %s1450_s8 = inlined_call_operand.vmem [shape: f32[1,128], index: 8, kind: input, shape index: {}]   ;;  %s1451_s9 = inlined_call_operand.hbm [shape: f32[2,128], index: 9, kind: output, shape index: {}]  }
   0x1   :  { %15 = vsyncpa [#allocation6], 0 }
   0x2   :  { %16 = vsyncpa [#allocation9], 0 }
   0x3   :  { %17 = vsyncpa [#allocation12], 0 }
   0x4   :  { %18 = vsyncpa [#allocation4], 0  ;;  %s1218_s30 = smov [#allocation5]   ;;  %s1219_s11 = smov [#allocation8]  }
   0x5   :  { %s35_s10 = sshll.u32 %s1218_s30, 4  ;;  %s54_s12 = sshll.u32 %s1219_s11, 4  ;;  %s36_s10 = int_to_ptr.vmem [resolvable:$true] %s35_s10  ;;  %s1282_s12 = int_to_ptr.vmem [resolvable:$true] %s54_s12 }
   0x6   :  { %s1054_s15 = scalar_lea.hbm %s1443_s1, 32 }
   0x7   :  { %p1055_p0 = scmp.ne.s32.totalorder %s1443_s1, %s1054_s15  ;;  %p1058_p1 = scmp.lt.u32.totalorder %s1054_s15, %s1443_s1 }
   0x9   :  { %p1060_p2 = pnand %p1058_p1, %p1055_p0 }
   0xb   :  { %1063 = shalt.err (!%p1060_p2)
}
   0xc   :  { %s1064_s20 = scalar_lea.vmem %s36_s10, 32  ;;  %p1069_p4 = scmp.lt.s32.totalorder %s36_s10, %s36_s10 }
   0xd   :  { %p1065_p3 = scmp.ne.s32.totalorder %s36_s10, %s1064_s20  ;;  %p1070_p5 = scmp.lt.s32.totalorder %s1064_s20, %s1064_s20 }
   0xf   :  { %p1071_p6 = por %p1070_p5, %p1069_p4 }
  0x11   :  { %p1072_p7 = pnand %p1071_p6, %p1065_p3 }
  0x13   :  { %1075 = shalt.err (!%p1072_p7)
}
  0x14   :  { %38 = dma.hbm_to_vmem [thread:$0]  %s1443_s1, 32, %s36_s10, [#allocation6]  }
  0x15   :  { %s1076_s25 = scalar_lea.hbm %s1445_s3, 1152 }
  0x16   :  { %p1077_p8 = scmp.ne.s32.totalorder %s1445_s3, %s1076_s25  ;;  %p1080_p9 = scmp.lt.u32.totalorder %s1076_s25, %s1445_s3 }
  0x18   :  { %p1082_p10 = pnand %p1080_p9, %p1077_p8 }
  0x1a   :  { %1085 = shalt.err (!%p1082_p10)
}
  0x1b   :  { %s1086_s30 = scalar_lea.vmem %s1282_s12, 1152  ;;  %p1091_p12 = scmp.lt.s32.totalorder %s1282_s12, %s1282_s12 }
  0x1c   :  { %p1087_p11 = scmp.ne.s32.totalorder %s1282_s12, %s1086_s30  ;;  %p1092_p13 = scmp.lt.s32.totalorder %s1086_s30, %s1086_s30 }
  0x1e   :  { %p1093_p0 = por %p1092_p13, %p1091_p12 }
  0x20   :  { %p1094_p1 = pnand %p1093_p0, %p1087_p11 }
  0x22   :  { %1097 = shalt.err (!%p1094_p1)
}
  0x23   :  { %s1220_s1 = smov 384   ;;  %s1221_s10 = smov 24  }
  0x24   :  { %60 = dma.hbm_to_vmem [thread:$0]  %s1445_s3, 1152, %s1282_s12, [#allocation9], %s1220_s1, %s1220_s1, %s1221_s10  }
  0x25   :  { %s1222_s14 = smov [#allocation2]   ;;  %s1223_s16 = smov [#allocation7]  }
  0x26   :  { %s25_s15 = sshll.u32 %s1222_s14, 4  ;;  %s45_s17 = sshll.u32 %s1223_s16, 4  ;;  %s26_s15 = int_to_ptr.vmem [resolvable:$true] %s25_s15  ;;  %s46_s17 = int_to_ptr.vmem [resolvable:$true] %s45_s17 }
  0x27   :  { %s1098_s20 = scalar_lea.hbm %s1442_s0, 32 }
  0x28   :  { %p1099_p2 = scmp.ne.s32.totalorder %s1442_s0, %s1098_s20  ;;  %p1102_p3 = scmp.lt.u32.totalorder %s1098_s20, %s1442_s0 }
  0x2a   :  { %p1104_p4 = pnand %p1102_p3, %p1099_p2 }
  0x2c   :  { %1107 = shalt.err (!%p1104_p4)
}
  0x2d   :  { %s1108_s3 = scalar_lea.vmem %s26_s15, 32  ;;  %p1113_p6 = scmp.lt.s32.totalorder %s26_s15, %s26_s15 }
  0x2e   :  { %p1109_p5 = scmp.ne.s32.totalorder %s26_s15, %s1108_s3  ;;  %p1114_p7 = scmp.lt.s32.totalorder %s1108_s3, %s1108_s3 }
  0x30   :  { %p1115_p8 = por %p1114_p7, %p1113_p6 }
  0x32   :  { %p1116_p9 = pnand %p1115_p8, %p1109_p5 }
  0x34   :  { %1119 = shalt.err (!%p1116_p9)
}
  0x35   :  { %28 = dma.hbm_to_vmem [thread:$0]  %s1442_s0, 32, %s26_s15, [#allocation3]  }
  0x36   :  { %s1120_s28 = scalar_lea.hbm %s1444_s2, 384 }
  0x37   :  { %p1121_p10 = scmp.ne.s32.totalorder %s1444_s2, %s1120_s28  ;;  %p1124_p11 = scmp.lt.u32.totalorder %s1120_s28, %s1444_s2 }
  0x39   :  { %p1126_p12 = pnand %p1124_p11, %p1121_p10 }
  0x3b   :  { %1129 = shalt.err (!%p1126_p12)
}
  0x3c   :  { %s1130_s14 = scalar_lea.vmem %s46_s17, 384  ;;  %p1135_p0 = scmp.lt.s32.totalorder %s46_s17, %s46_s17 }
  0x3d   :  { %p1131_p13 = scmp.ne.s32.totalorder %s46_s17, %s1130_s14  ;;  %p1136_p1 = scmp.lt.s32.totalorder %s1130_s14, %s1130_s14 }
  0x3f   :  { %p1137_p2 = por %p1136_p1, %p1135_p0 }
  0x41   :  { %p1138_p3 = pnand %p1137_p2, %p1131_p13 }
  0x43   :  { %1141 = shalt.err (!%p1138_p3)
}
  0x44   :  { %48 = dma.hbm_to_vmem [thread:$0]  %s1444_s2, 384, %s46_s17, [#allocation6]  }
  0x45   :  { %s1224_s16 = smov [#allocation10]   ;;  %s1225_s19 = smov [#allocation11]  }
  0x46   :  { %s68_s18 = sshll.u32 %s1224_s16, 4  ;;  %s82_s20 = sshll.u32 %s1225_s19, 4  ;;  %s69_s18 = int_to_ptr.vmem [resolvable:$true] %s68_s18  ;;  %s1340_s20 = int_to_ptr.vmem [resolvable:$true] %s82_s20 }
  0x47   :  { %s1142_s23 = scalar_lea.hbm %s1447_s5, 6144 }
  0x48   :  { %p1143_p4 = scmp.ne.s32.totalorder %s1447_s5, %s1142_s23  ;;  %p1146_p5 = scmp.lt.u32.totalorder %s1142_s23, %s1447_s5 }
  0x4a   :  { %p1148_p6 = pnand %p1146_p5, %p1143_p4 }
  0x4c   :  { %1151 = shalt.err (!%p1148_p6)
}
  0x4d   :  { %s1152_s2 = scalar_lea.vmem %s69_s18, 6144  ;;  %p1157_p8 = scmp.lt.s32.totalorder %s69_s18, %s69_s18 }
  0x4e   :  { %p1153_p7 = scmp.ne.s32.totalorder %s69_s18, %s1152_s2  ;;  %p1158_p9 = scmp.lt.s32.totalorder %s1152_s2, %s1152_s2 }
  0x50   :  { %p1159_p10 = por %p1158_p9, %p1157_p8 }
  0x52   :  { %p1160_p11 = pnand %p1159_p10, %p1153_p7 }
  0x54   :  { %1163 = shalt.err (!%p1160_p11)
}
  0x55   :  { %74 = dma.hbm_to_vmem [thread:$0]  %s1447_s5, 6144, %s69_s18, [#allocation9], %s1220_s1, %s1220_s1, %s1221_s10  }
  0x56   :  { %s1164_s29 = scalar_lea.hbm %s1449_s7, 2048 }
  0x57   :  { %p1165_p12 = scmp.ne.s32.totalorder %s1449_s7, %s1164_s29  ;;  %p1168_p13 = scmp.lt.u32.totalorder %s1164_s29, %s1449_s7 }
  0x59   :  { %p1170_p0 = pnand %p1168_p13, %p1165_p12 }
  0x5b   :  { %1173 = shalt.err (!%p1170_p0)
}
  0x5c   :  { %s1174_s0 = scalar_lea.vmem %s1340_s20, 2048  ;;  %p1179_p2 = scmp.lt.s32.totalorder %s1340_s20, %s1340_s20 }
  0x5d   :  { %p1175_p1 = scmp.ne.s32.totalorder %s1340_s20, %s1174_s0  ;;  %p1180_p3 = scmp.lt.s32.totalorder %s1174_s0, %s1174_s0 }
  0x5f   :  { %p1181_p4 = por %p1180_p3, %p1179_p2 }
  0x61   :  { %p1182_p5 = pnand %p1181_p4, %p1175_p1 }
  0x63   :  { %1185 = shalt.err (!%p1182_p5)
}
  0x64   :  { %s1226_s5 = smov 128   ;;  %s1227_s1 = smov 8  }
  0x65   :  { %88 = dma.hbm_to_vmem [thread:$0]  %s1449_s7, 2048, %s1340_s20, [#allocation12], %s1226_s5, %s1226_s5, %s1227_s1  }
  0x66   :  { %1208 = dma.done.wait [#allocation3], 32  }
  0x67   :  { %1209 = vsyncadd [#allocation3], 4294967264 }
  0x68   :  { %1210 = dma.done.wait [#allocation6], 416  }
  0x69   :  { %1211 = vsyncadd [#allocation6], 4294966880 }
  0x6a   :  { %1212 = dma.done.wait [#allocation9], 7296  }
  0x6b   :  { %1213 = vsyncadd [#allocation9], 4294960000 }
  0x6c   :  { %1214 = dma.done.wait [#allocation12], 2048  }
  0x6d   :  { %1215 = vsyncadd [#allocation12], 4294965248  ;;  %v1228_v0 = vmov 0.0   ;;  %v115_v1 = vld [vmem:[#allocation8 + $0x8] sm:$0xff]  ;;  %v118_v2 = vld [vmem:[#allocation8 + $0x20] sm:$0xff]  ;;  %vm123_vm0 = vcmask 195584  }
  0x6e   :  { %191 = vmatprep.mubr.f32.mxu1 %v1228_v0  ;;  %578 = vmatprep.mubr.f32.mxu0 %v1228_v0  ;;  %v114_v3 = vld [vmem:[#allocation8] sm:$0xff]  ;;  %v923_v4 = vpack.c.bf16 %v118_v2, %v115_v1  ;;  %v117_v5 = vld [vmem:[#allocation8 + $0x18] sm:$0xff]  ;;  %v116_v8 = vld [vmem:[#allocation8 + $0x10] sm:$0xff]  ;;  %v1229_v13 = vmov 0.0|0.0   ;;  %vm1230_vm1 = vmmov 0   ;;  %vm268_vm2 = vcmask 64512  }
  0x6f   :  { %v925_v6 = vpack.c.bf16 %v117_v5, %v114_v3  ;;  %v121_v7 = vld [vmem:[#allocation8 + $0x38] sm:$0xff]  ;;  %v119_v9 = vld [vmem:[#allocation8 + $0x28] sm:$0xff]  ;;  %v120_v10 = vld [vmem:[#allocation8 + $0x30] sm:$0xff]  ;;  %s1231_s20 = smov [#allocation13]  }
  0x70   :  { %924 = vmatprep.subr.bf16.mxu1 %v923_v4  ;;  %v113_v11 = vld [vmem:[#allocation5] sm:$0x3]  ;;  %v928_v12 = vpack.c.bf16 %v119_v9, %v116_v8  ;;  %v111_v15 = vld [vmem:[#allocation7 + $0x8] sm:$0xff]  ;;  %v110_v16 = vld [vmem:[#allocation7] sm:$0xff]  ;;  %s777_s21 = sshll.u32 %s1231_s20, 4  ;;  %s778_s21 = int_to_ptr.vmem [resolvable:$true] %s777_s21 }
  0x71   :  { %926 = vmatpush1.bf16.msra.mxu1 %v925_v6  ;;  %v122_v14 = vld [vmem:[#allocation8 + $0x40] sm:$0xff]  ;;  %v112_v18 = vld [vmem:[#allocation7 + $0x10] sm:$0xff]  ;;  %v450_v19 = vld [vmem:[#allocation10 + $0x8] sm:$0xff]  ;;  %s1186_s22 = scalar_lea.vmem %s778_s21, 32  ;;  %p1191_p7 = scmp.lt.s32.totalorder %s778_s21, %s778_s21 }
  0x72   :  { %131 = vmatprep.subr.mxu1 %v121_v7  ;;  %v109_v17 = vld [vmem:[#allocation2] sm:$0x3]  ;;  %v453_v20 = vld [vmem:[#allocation10 + $0x20] sm:$0xff]  ;;  %v451_v24 = vld [vmem:[#allocation10 + $0x10] sm:$0xff]  ;;  %p1187_p6 = scmp.ne.s32.totalorder %s778_s21, %s1186_s22  ;;  %p1192_p8 = scmp.lt.s32.totalorder %s1186_s22, %s1186_s22 }
  0x73   :  { %v930_v21 = vpack.c.bf16 %v453_v20, %v450_v19  ;;  %v449_v22 = vld [vmem:[#allocation10] sm:$0xff]  ;;  %v452_v23 = vld [vmem:[#allocation10 + $0x18] sm:$0xff]  ;;  %v454_v26 = vld [vmem:[#allocation10 + $0x28] sm:$0xff] }
  0x74   :  { %v932_v25 = vpack.c.bf16 %v452_v23, %v449_v22  ;;  %v963_v27 = vpack.c.bf16 %v454_v26, %v451_v24  ;;  %v456_v28 = vld [vmem:[#allocation10 + $0x38] sm:$0xff]  ;;  %v459_v29 = vld [vmem:[#allocation10 + $0x50] sm:$0xff]  ;;  %v458_v32 = vld [vmem:[#allocation10 + $0x48] sm:$0xff]  ;;  %p1193_p9 = por %p1192_p8, %p1191_p7 }
  0x75   :  { %132 = vmatpush1.msra.mxu1 %v120_v10  ;;  %931 = vmatprep.subr.bf16.mxu0 %v930_v21  ;;  %v934_v30 = vpack.c.bf16 %v459_v29, %v456_v28  ;;  %v455_v31 = vld [vmem:[#allocation10 + $0x30] sm:$0xff]  ;;  %v457_v33 = vld [vmem:[#allocation10 + $0x40] sm:$0xff]  ;;  %v460_v35 = vld [vmem:[#allocation10 + $0x58] sm:$0xff]  ;;  %v415_v29 = vlaneseq }
  0x76   :  { %927 = vmatprep.subr.bf16.mxu1 %v1229_v13  ;;  %789 = vmatmul.mubr.msk.f32.vlgmr.msra.gmra.mrb[0].mxu1 %vm123_vm0, %v113_v11  ;;  %v936_v34 = vpack.c.bf16 %v458_v32, %v455_v31  ;;  %v966_v36 = vpack.c.bf16 %v460_v35, %v457_v33  ;;  %v462_v37 = vld [vmem:[#allocation10 + $0x68] sm:$0xff]  ;;  %v465_v38 = vld [vmem:[#allocation10 + $0x80] sm:$0xff]  ;;  %v464_v41 = vld [vmem:[#allocation10 + $0x78] sm:$0xff]  ;;  %p1194_p10 = pnand %p1193_p9, %p1187_p6 }
  0x77   :  { %929 = vmatpush3.bf16.msra.mxu1 %v928_v12  ;;  %845 = vmatprep.mubr.msk.f32.mxu1 %vm1230_vm1, %v1228_v0  ;;  %v938_v39 = vpack.c.bf16 %v465_v38, %v462_v37  ;;  %v461_v40 = vld [vmem:[#allocation10 + $0x60] sm:$0xff]  ;;  %v463_v42 = vld [vmem:[#allocation10 + $0x70] sm:$0xff]  ;;  %v466_v44 = vld [vmem:[#allocation10 + $0x88] sm:$0xff] }
  0x78   :  { %843 = vmatprep.subr.mxu1 %v1228_v0  ;;  %933 = vmatpush1.bf16.msra.mxu0 %v932_v25  ;;  %v940_v43 = vpack.c.bf16 %v464_v41, %v461_v40  ;;  %v969_v45 = vpack.c.bf16 %v466_v44, %v463_v42  ;;  %v468_v46 = vld [vmem:[#allocation10 + $0x98] sm:$0xff]  ;;  %v471_v47 = vld [vmem:[#allocation10 + $0xb0] sm:$0xff]  ;;  %v470_v50 = vld [vmem:[#allocation10 + $0xa8] sm:$0xff] }
  0x79   :  { %935 = vmatprep.subr.bf16.mxu0 %v934_v30  ;;  %v942_v48 = vpack.c.bf16 %v471_v47, %v468_v46  ;;  %v467_v49 = vld [vmem:[#allocation10 + $0x90] sm:$0xff]  ;;  %v469_v51 = vld [vmem:[#allocation10 + $0xa0] sm:$0xff]  ;;  %v472_v53 = vld [vmem:[#allocation10 + $0xb8] sm:$0xff]  ;;  %v1395_v30 = vshrl.u32 %v415_v29, 7 }
  0x7a   :  { %v944_v52 = vpack.c.bf16 %v470_v50, %v467_v49  ;;  %v972_v54 = vpack.c.bf16 %v472_v53, %v469_v51  ;;  %v474_v55 = vld [vmem:[#allocation10 + $0xc8] sm:$0xff]  ;;  %v477_v56 = vld [vmem:[#allocation10 + $0xe0] sm:$0xff]  ;;  %v476_v59 = vld [vmem:[#allocation10 + $0xd8] sm:$0xff] }
  0x7b   :  { %844 = vmatpush3.msra.mxu1 %v122_v14  ;;  %v946_v57 = vpack.c.bf16 %v477_v56, %v474_v55  ;;  %v473_v58 = vld [vmem:[#allocation10 + $0xc0] sm:$0xff]  ;;  %v475_v60 = vld [vmem:[#allocation10 + $0xd0] sm:$0xff]  ;;  %v478_v62 = vld [vmem:[#allocation10 + $0xe8] sm:$0xff]  ;;  %v417_v31 = vsub.s32 0, %v1395_v30 }
  0x7c   :  { %846 = vmatmul.mubr.msk.f32.vlgmr.msra.gmra.mrb[2].mxu1 %vm123_vm0, %v113_v11  ;;  %272 = vmatprep.subr.mxu1 %v111_v15  ;;  %v948_v61 = vpack.c.bf16 %v476_v59, %v473_v58  ;;  %v975_v63 = vpack.c.bf16 %v478_v62, %v475_v60  ;;  %v480_v1 = vld [vmem:[#allocation10 + $0xf8] sm:$0xff]  ;;  %v483_v2 = vld [vmem:[#allocation10 + $0x110] sm:$0xff]  ;;  %v482_v5 = vld [vmem:[#allocation10 + $0x108] sm:$0xff] }
  0x7d   :  { %273 = vmatpush1.msra.mxu1 %v110_v16  ;;  %336 = vmatprep.mubr.f32.mxu1 %v1228_v0  ;;  %v950_v3 = vpack.c.bf16 %v483_v2, %v480_v1  ;;  %v479_v4 = vld [vmem:[#allocation10 + $0xf0] sm:$0xff]  ;;  %v481_v6 = vld [vmem:[#allocation10 + $0x100] sm:$0xff]  ;;  %v484_v8 = vld [vmem:[#allocation10 + $0x118] sm:$0xff] }
  0x7e   :  { %848 = vmatprep.subr.mxu1 %v1228_v0  ;;  %937 = vmatpush1.bf16.msra.mxu0 %v936_v34  ;;  %v952_v7 = vpack.c.bf16 %v482_v5, %v479_v4  ;;  %v486_v9 = vld [vmem:[#allocation10 + $0x128] sm:$0xff]  ;;  %v489_v10 = vld [vmem:[#allocation10 + $0x140] sm:$0xff]  ;;  %v978_v11 = vpack.c.bf16 %v484_v8, %v481_v6  ;;  %v488_v15 = vld [vmem:[#allocation10 + $0x138] sm:$0xff] }
  0x7f   :  { %939 = vmatprep.subr.bf16.mxu0 %v938_v39  ;;  %v954_v12 = vpack.c.bf16 %v489_v10, %v486_v9  ;;  %v485_v14 = vld [vmem:[#allocation10 + $0x120] sm:$0xff]  ;;  %v487_v16 = vld [vmem:[#allocation10 + $0x130] sm:$0xff]  ;;  %v492_v19 = vld [vmem:[#allocation10 + $0x158] sm:$0xff] }
  0x80   :  { %791 = vmatmul.mubr.msk.f32.vlgmr.msra.gmra.mrb[0].mxu1 %vm268_vm2, %v109_v17  ;;  %v495_v20 = vld [vmem:[#allocation10 + $0x170] sm:$0xff]  ;;  %v494_v24 = vld [vmem:[#allocation10 + $0x168] sm:$0xff]  ;;  %v493_v25 = vld [vmem:[#allocation10 + $0x160] sm:$0xff] }
  0x81   :  { %849 = vmatpush3.msra.mxu1 %v112_v18  ;;  %850 = vmatprep.mubr.msk.f32.mxu1 %vm1230_vm1, %v1228_v0  ;;  %v490_v18 = vld [vmem:[#allocation10 + $0x148] sm:$0xff]  ;;  %v958_v22 = vpack.c.bf16 %v495_v20, %v492_v19  ;;  %v491_v23 = vld [vmem:[#allocation10 + $0x150] sm:$0xff]  ;;  %v496_v26 = vld [vmem:[#allocation10 + $0x178] sm:$0xff] }
  0x82   :  { %962 = vmatprep.subr.bf16.mxu1 %v1229_v13  ;;  %941 = vmatpush1.bf16.msra.mxu0 %v940_v43  ;;  %v981_v21 = vpack.c.bf16 %v490_v18, %v487_v16  ;;  %v984_v28 = vpack.c.bf16 %v496_v26, %v493_v25  ;;  %v413_v32 = vld [vmem:[%s1446_s4] sm:$0x7]  ;;  %v421_v43 = vsub.s32 1, %v1395_v30  ;;  %v671_v60 = vld [vmem:[#allocation11] sm:$0xff]  ;;  %v674_v1 = vld [vmem:[#allocation11 + $0x18] sm:$0xff] }
  0x83   :  { %943 = vmatprep.subr.bf16.mxu0 %v942_v48  ;;  %v418_v35 = vrot.slane %v413_v32, %v417_v31  ;;  %v676_v4 = vld [vmem:[#allocation11 + $0x28] sm:$0xff]  ;;  %v677_v6 = vld [vmem:[#allocation11 + $0x30] sm:$0xff]  ;;  %v679_v8 = vld [vmem:[#allocation11 + $0x40] sm:$0xff] }
  0x84   :  { %851 = vmatmul.mubr.msk.f32.vlgmr.msra.gmra.mrb[4].mxu1 %vm268_vm2, %v109_v17  ;;  %v956_v17 = vpack.c.bf16 %v488_v15, %v485_v14  ;;  %v422_v47 = vrot.slane %v413_v32, %v421_v43  ;;  %v680_v9 = vld [vmem:[#allocation11 + $0x48] sm:$0xff]  ;;  %v683_v14 = vld [vmem:[#allocation11 + $0x60] sm:$0xff]  ;;  %v685_v18 = vld [vmem:[#allocation11 + $0x70] sm:$0xff] }
  0x85   :  { %885 = vmatprep.mubr.msk.f32.mxu1 %vm1230_vm1, %v1228_v0  ;;  %964 = vmatpush3.bf16.msra.mxu1 %v963_v27  ;;  %v960_v27 = vpack.c.bf16 %v494_v24, %v491_v23  ;;  %v999_v10 = vpack.c.bf16 %v680_v9, %v679_v8  ;;  %v684_v16 = vld [vmem:[#allocation11 + $0x68] sm:$0xff]  ;;  %v686_v19 = vld [vmem:[#allocation11 + $0x78] sm:$0xff] }
  0x86   :  { %965 = vmatprep.subr.bf16.mxu1 %v1229_v13  ;;  %945 = vmatpush1.bf16.msra.mxu0 %v944_v52  ;;  %v1008_v20 = vpack.c.bf16 %v686_v19, %v685_v18 }
  0x87   :  { %947 = vmatprep.subr.bf16.mxu0 %v946_v57 }
  0x89   :  { %967 = vmatpush3.bf16.msra.mxu1 %v966_v36  ;;  %v425_v36 = vsub.s32 2, %v1395_v30  ;;  %v797_v30 = vld [vmem:[%s1450_s8] ss:$0 sm:$0xff] }
  0x8a   :  { %968 = vmatprep.subr.bf16.mxu1 %v1229_v13  ;;  %949 = vmatpush1.bf16.msra.mxu0 %v948_v61  ;;  %v672_v61 = vld [vmem:[#allocation11 + $0x8] sm:$0xff] }
  0x8b   :  { %951 = vmatprep.subr.bf16.mxu0 %v950_v3  ;;  %v426_v41 = vrot.slane %v413_v32, %v425_v36  ;;  %v987_v62 = vpack.c.bf16 %v672_v61, %v671_v60  ;;  %v675_v3 = vld [vmem:[#allocation11 + $0x20] sm:$0xff] }
  0x8c   :  { %v993_v5 = vpack.c.bf16 %v676_v4, %v675_v3 }
  0x8d   :  { %970 = vmatpush3.bf16.msra.mxu1 %v969_v45 }
  0x8e   :  { %971 = vmatprep.subr.bf16.mxu1 %v1229_v13  ;;  %953 = vmatpush1.bf16.msra.mxu0 %v952_v7 }
  0x8f   :  { %955 = vmatprep.subr.bf16.mxu0 %v954_v12  ;;  %v682_v12 = vld [vmem:[#allocation11 + $0x58] sm:$0xff] }
  0x91   :  { %973 = vmatpush3.bf16.msra.mxu1 %v972_v54 }
  0x92   :  { %974 = vmatprep.subr.bf16.mxu1 %v1229_v13  ;;  %957 = vmatpush1.bf16.msra.mxu0 %v956_v17  ;;  %v1005_v17 = vpack.c.bf16 %v684_v16, %v683_v14 }
  0x93   :  { %959 = vmatprep.subr.bf16.mxu0 %v958_v22 }
  0x95   :  { %976 = vmatpush3.bf16.msra.mxu1 %v975_v63  ;;  %v673_v63 = vld [vmem:[#allocation11 + $0x10] sm:$0xff] }
  0x96   :  { %977 = vmatprep.subr.bf16.mxu1 %v1229_v13  ;;  %961 = vmatpush1.bf16.msra.mxu0 %v960_v27  ;;  %v990_v2 = vpack.c.bf16 %v674_v1, %v673_v63 }
  0x97   :  { %986 = vmatprep.subr.bf16.mxu0 %v1229_v13 }
  0x99   :  { %979 = vmatpush3.bf16.msra.mxu1 %v978_v11  ;;  %v681_v11 = vld [vmem:[#allocation11 + $0x50] sm:$0xff] }
  0x9a   :  { %980 = vmatprep.subr.bf16.mxu1 %v1229_v13  ;;  %v1002_v15 = vpack.c.bf16 %v682_v12, %v681_v11 }
  0x9d   :  { %982 = vmatpush3.bf16.msra.mxu1 %v981_v21  ;;  %v497_v21 = vld [vmem:[%s1448_s6] sm:$0x7] }
  0x9e   :  { %983 = vmatprep.subr.bf16.mxu1 %v1229_v13  ;;  %v502_v22 = vrot.slane %v497_v21, %v417_v31  ;;  %v510_v26 = vrot.slane %v497_v21, %v425_v36 }
  0xa1   :  { %985 = vmatpush3.bf16.msra.mxu1 %v984_v28 }
 0x14f   :  { %v264_v33 = vpop.f32.mrb[2].mxu1 }
 0x150   :  { %v847_v34 = vpop.f32.mrb[3].mxu1 }
 0x153   :  { %v338_v37 = vpop.f32.mrb[0].mxu1 }
 0x154   :  { %v430_v38 = vadd.f32 %v418_v35, %v338_v37  ;;  %v340_v39 = vpop.f32.mrb[1].mxu1 }
 0x155   :  { %v431_v49 = vadd.f32 %v422_v47, %v340_v39 }
 0x156   :  { %v793_v40 = vmul.f32 -1.442695, %v430_v38 }
 0x157   :  { %v409_v42 = vpop.f32.mrb[4].mxu1 }
 0x158   :  { %1026 = vpow2.f32 %v793_v40  ;;  %v410_v44 = vadd.f32 %v409_v42, %v264_v33  ;;  %v852_v45 = vpop.f32.mrb[5].mxu1  ;;  %v506_v33 = vrot.slane %v497_v21, %v421_v43 }
 0x15a   :  { %v432_v46 = vadd.f32 %v426_v41, %v410_v44 }
 0x15c   :  { %v794_v48 = vmul.f32 -1.442695, %v432_v46 }
 0x15e   :  { %1028 = vpow2.f32 %v794_v48 }
 0x15f   :  { %1030 = vtanh.f32 %v431_v49 }
 0x162   :  { %v1027_v50 = vpop.eup %1026 }
 0x163   :  { %v436_v51 = vadd.f32 1.0, %v1027_v50 }
 0x165   :  { %1032 = vrcp.f32 %v436_v51 }
 0x168   :  { %v1029_v52 = vpop.eup %1028 }
 0x169   :  { %v443_v53 = vadd.f32 1.0, %v1029_v52  ;;  %v1031_v54 = vpop.eup %1030 }
 0x16b   :  { %1034 = vrcp.f32 %v443_v53 }
 0x16f   :  { %v1033_v55 = vpop.eup %1032 }
 0x170   :  { %v446_v56 = vmul.f32 %v1033_v55, %v1031_v54 }
 0x172   :  { %1036 = vtanh.f32 %v446_v56 }
 0x175   :  { %v1035_v57 = vpop.eup %1034 }
 0x17c   :  { %v1037_v58 = vpop.eup %1036 }
 0x17d   :  { %v448_v59 = vmul.f32 %v1037_v58, %v1035_v57 }
 0x17f   :  { %579 = vmatmul.mubr.f32.vlgmr.msra.gmra.mrb[0].mxu0 %v448_v59  ;;  %886 = vmatmul.mubr.f32.vlgmr.msra.gmra.mrb[6].mxu1 %v448_v59 }
 0x180   :  { %920 = vmatprep.mubr.msk.f32.mxu0 %vm1230_vm1, %v1228_v0  ;;  %988 = vmatpush3.bf16.msra.mxu0 %v987_v62  ;;  %v678_v0 = vld [vmem:[#allocation11 + $0x38] sm:$0xff] }
 0x181   :  { %989 = vmatprep.subr.bf16.mxu0 %v1229_v13  ;;  %v996_v7 = vpack.c.bf16 %v678_v0, %v677_v6 }
 0x184   :  { %991 = vmatpush3.bf16.msra.mxu0 %v990_v2 }
 0x185   :  { %992 = vmatprep.subr.bf16.mxu0 %v1229_v13 }
 0x188   :  { %994 = vmatpush3.bf16.msra.mxu0 %v993_v5 }
 0x189   :  { %995 = vmatprep.subr.bf16.mxu0 %v1229_v13 }
 0x18c   :  { %997 = vmatpush3.bf16.msra.mxu0 %v996_v7 }
 0x18d   :  { %998 = vmatprep.subr.bf16.mxu0 %v1229_v13 }
 0x190   :  { %1000 = vmatpush3.bf16.msra.mxu0 %v999_v10 }
 0x191   :  { %1001 = vmatprep.subr.bf16.mxu0 %v1229_v13 }
 0x194   :  { %1003 = vmatpush3.bf16.msra.mxu0 %v1002_v15 }
 0x195   :  { %1004 = vmatprep.subr.bf16.mxu0 %v1229_v13 }
 0x198   :  { %1006 = vmatpush3.bf16.msra.mxu0 %v1005_v17 }
 0x199   :  { %1007 = vmatprep.subr.bf16.mxu0 %v1229_v13 }
 0x19c   :  { %1009 = vmatpush3.bf16.msra.mxu0 %v1008_v20 }
 0x252   :  { %v580_v23 = vpop.f32.mrb[0].mxu0  ;;  %v651_v24 = vpop.f32.mrb[6].mxu1 }
 0x253   :  { %v581_v25 = vadd.f32 %v580_v23, %v502_v22  ;;  %v582_v27 = vpop.f32.mrb[1].mxu0  ;;  %v887_v28 = vpop.f32.mrb[7].mxu1  ;;  %v652_v32 = vadd.f32 %v651_v24, %v510_v26 }
 0x254   :  { %v583_v34 = vadd.f32 %v582_v27, %v506_v33 }
 0x255   :  { %v795_v29 = vmul.f32 -1.442695, %v581_v25  ;;  %v796_v13 = vmul.f32 -1.442695, %v652_v32 }
 0x257   :  { %1038 = vpow2.f32 %v795_v29 }
 0x258   :  { %1040 = vpow2.f32 %v796_v13 }
 0x259   :  { %1042 = vtanh.f32 %v583_v34 }
 0x261   :  { %v1039_v35 = vpop.eup %1038 }
 0x262   :  { %v658_v37 = vadd.f32 1.0, %v1039_v35  ;;  %v1041_v31 = vpop.eup %1040 }
 0x263   :  { %v665_v38 = vadd.f32 1.0, %v1041_v31  ;;  %v1043_v39 = vpop.eup %1042 }
 0x264   :  { %1044 = vrcp.f32 %v658_v37 }
 0x265   :  { %1046 = vrcp.f32 %v665_v38 }
 0x26e   :  { %v1045_v40 = vpop.eup %1044 }
 0x26f   :  { %v668_v36 = vmul.f32 %v1045_v40, %v1043_v39  ;;  %v1047_v41 = vpop.eup %1046 }
 0x271   :  { %1048 = vtanh.f32 %v668_v36 }
 0x27b   :  { %v1049_v42 = vpop.eup %1048 }
 0x27c   :  { %v670_v44 = vmul.f32 %v1049_v42, %v1047_v41 }
 0x27e   :  { %921 = vmatmul.mubr.f32.vlgmr.msra.gmra.mrb[2].mxu0 %v670_v44 }
 0x351   :  { %v760_v43 = vpop.f32.mrb[2].mxu0 }
 0x352   :  { %v761_v45 = vadd.f32 %v797_v30, %v760_v43  ;;  %v922_v46 = vpop.f32.mrb[3].mxu0 }
 0x354   :  { %v798_v47 = vmul.f32 -1.442695, %v761_v45 }
 0x356   :  { %1050 = vpow2.f32 %v798_v47 }
 0x360   :  { %v1051_v48 = vpop.eup %1050 }
 0x361   :  { %v767_v49 = vadd.f32 1.0, %v1051_v48 }
 0x363   :  { %1052 = vrcp.f32 %v767_v49 }
 0x36d   :  { %v1053_v50 = vpop.eup %1052 }
 0x36e   :  { %770 = vst [vmem:[#allocation13] sm:$0x3] %v1053_v50 }
 0x36f   :  { %1197 = shalt.err (!%p1194_p10)
}
 0x370   :  { %s1198_s24 = scalar_lea.hbm %s1451_s9, 32 }
 0x371   :  { %p1199_p11 = scmp.ne.s32.totalorder %s1451_s9, %s1198_s24  ;;  %p1202_p12 = scmp.lt.u32.totalorder %s1198_s24, %s1451_s9 }
 0x373   :  { %p1204_p13 = pnand %p1202_p12, %p1199_p11 }
 0x375   :  { %1207 = shalt.err (!%p1204_p13)
}
 0x376   :  { %780 = dma.vmem_to_hbm [thread:$0]  %s778_s21, 32, %s1451_s9, [#allocation4]  }
 0x377   :  { %1216 = dma.done.wait [#allocation4], 32  }
 0x378   :  { %1217 = vsyncadd [#allocation4], 4294967264 }
 0x379   :  { %784 = vsyncpa [#allocation3], 1 }
 0x37a   :  { %785 = vsyncpa [#allocation6], 1 }
 0x37b   :  { %786 = vsyncpa [#allocation9], 1 }
 0x37c   :  { %787 = vsyncpa [#allocation12], 1 }
 0x37d   :  { %788 = vsyncpa [#allocation4], 1 }

</bundles_post_ra>
